<compile_context>
chip_gen: v5e
topology: v5e:2x2
jax: 0.10.0
libtpu: 0.0.40
codegen_flags: <defaults>
</compile_context>

<pallas_src>
import functools

import numpy as np
import jax
import jax.numpy as jnp
from jax.experimental import pallas as pl
from jax.experimental.pallas import tpu as pltpu

# ---- STFT parameters (mirror of the module defaults at small scale) ----
N_FFT = 64
WIN_LENGTH = N_FFT                 # win_length = n_fft
HOP = WIN_LENGTH // 4              # hop_length = win_length // 4 = 16
ROWS = 1 + N_FFT // 2              # 33 (onesided bins)
PAD = N_FFT // 2                   # center padding (reflect) = 32
LANE = 128
N_COLS = ((2 * ROWS + LANE - 1) // LANE) * LANE   # 128: [real | imag | zero-pad]


def make_stft_weight():
    """Fold periodic-Hann window + real/imag DFT basis into one small
    (N_FFT, 128) float32 matrix.  Columns [0:ROWS] produce the real part,
    [ROWS:2*ROWS] the imaginary part, the rest are zero lane padding."""
    n = N_FFT
    k = np.arange(n)
    W = np.exp(-2j * np.pi * np.outer(k, k) / n)                 # (n, n) DFT
    window = 0.5 - 0.5 * np.cos(2.0 * np.pi * k / n)             # periodic Hann
    Wc = W[:, :ROWS] * window[:, None]                           # (n, ROWS)
    w = np.zeros((n, N_COLS), dtype=np.float64)
    w[:, :ROWS] = np.real(Wc)
    w[:, ROWS:2 * ROWS] = np.imag(Wc)
    return jnp.asarray(w.astype(np.float32))                     # ~32 KB


def stft_kernel(xpad_ref, w_ref, out_ref, frames_ref, *, B, T):
    # xpad_ref : (B, Lp)        reflect-padded signal, resident in VMEM (~2.5 KB)
    # w_ref    : (N_FFT, 128)   folded Hann+DFT weight (~32 KB)
    # out_ref  : (B*T, 128)     lane-dense output (real | imag | pad)
    # frames_ref: VMEM scratch (B*T, N_FFT) frame matrix (im2col), ~8.5 KB
    for b in range(B):
        row = xpad_ref[b:b + 1, :]                       # (1, Lp), loaded once
        for t in range(T):
            r = b * T + t
            frames_ref[r:r + 1, :] = row[:, t * HOP:t * HOP + N_FFT]
    # One MXU matmul: (B*T, 64) @ (64, 128) -> (B*T, 128), unmasked lane stores.
    out_ref[...] = jnp.dot(frames_ref[...], w_ref[...],
                           precision=jax.lax.Precision.HIGHEST,
                           preferred_element_type=jnp.float32)


@jax.jit
def stft(x, w_small):
    """x: (B, L) float32 -> (real, imag) each (B, 1, T, ROWS) float32."""
    B, L = x.shape
    x_pad = jnp.pad(x, ((0, 0), (PAD, PAD)), mode="reflect")     # (B, Lp), tiny
    Lp = L + 2 * PAD
    T = (Lp - N_FFT) // HOP + 1
    M = B * T

    out = pl.pallas_call(
        functools.partial(stft_kernel, B=B, T=T),
        out_shape=jax.ShapeDtypeStruct((M, N_COLS), jnp.float32),
        grid_spec=pltpu.PrefetchScalarGridSpec(
            num_scalar_prefetch=0,
            grid=(1,),                                    # single step: no per-frame overhead
            in_specs=[
                pl.BlockSpec((B, Lp), lambda i: (0, 0)),          # whole padded signal
                pl.BlockSpec((N_FFT, N_COLS), lambda i: (0, 0)),  # small folded weight
            ],
            out_specs=pl.BlockSpec((M, N_COLS), lambda i: (0, 0)),
            scratch_shapes=[pltpu.VMEM((M, N_FFT), jnp.float32)],
        ),
        compiler_params=pltpu.CompilerParams(
            dimension_semantics=("arbitrary",)),
    )(x_pad, w_small)

    real = out[:, :ROWS].reshape(B, T, ROWS)[:, None, :, :]
    imag = out[:, ROWS:2 * ROWS].reshape(B, T, ROWS)[:, None, :, :]
    return real, imag


def _reference(x):
    """float64 numpy reference of the module's framed conv1d STFT."""
    n = N_FFT
    col, row = np.meshgrid(np.arange(n), np.arange(n))
    omega = np.exp(-2j * np.pi / n)
    W = np.power(omega, col * row)                        # matches dft_matrix()
    k = np.arange(n)
    window = 0.5 - 0.5 * np.cos(2.0 * np.pi * k / n)      # periodic Hann
    Wc = W[:, :ROWS] * window[:, None]
    wr = np.real(Wc)                                      # (n_fft, ROWS)
    wi = np.imag(Wc)

    x64 = np.asarray(x, dtype=np.float64)
    x_pad = np.pad(x64, ((0, 0), (PAD, PAD)), mode="reflect")
    Lp = x_pad.shape[1]
    T = (Lp - n) // HOP + 1
    frames = np.stack([x_pad[:, t * HOP:t * HOP + n] for t in range(T)],
                      axis=1)                             # (B, T, n_fft)
    real = np.einsum("btk,kr->btr", frames, wr)[:, None, :, :]
    imag = np.einsum("btk,kr->btr", frames, wi)[:, None, :, :]
    return real, imag


if __name__ == "__main__":
    key = jax.random.PRNGKey(0)
    B, L = 2, 256
    x = jax.random.normal(key, (B, L), dtype=jnp.float32)

    w_small = make_stft_weight()

    real, imag = stft(x, w_small)
    jax.block_until_ready((real, imag))

    real_ref, imag_ref = _reference(x)
    T = (L + 2 * PAD - N_FFT) // HOP + 1
    assert real.shape == real_ref.shape == (B, 1, T, ROWS)
    assert imag.shape == imag_ref.shape == (B, 1, T, ROWS)
    np.testing.assert_allclose(np.asarray(real), real_ref, rtol=1e-3, atol=1e-3)
    np.testing.assert_allclose(np.asarray(imag), imag_ref, rtol=1e-3, atol=1e-3)
    print("KERNEL_OK")
</pallas_src>

<mosaic_0001>
module attributes {stable_mosaic.version = 11 : i64} {
  func.func @stft_kernel(%arg0: i32, %arg1: memref<2x320xf32, #tpu.memory_space<vmem>>, %arg2: memref<64x128xf32, #tpu.memory_space<vmem>>, %arg3: memref<34x128xf32, #tpu.memory_space<vmem>>, %arg4: memref<34x64xf32, #tpu.memory_space<vmem>>) attributes {dimension_semantics = [#tpu.dimension_semantics<arbitrary>], iteration_bounds = array<i64: 1>, scalar_prefetch = 0 : i64, scratch_operands = 1 : i64, tpu.core_type = #tpu.core_type<tc>, window_params = [{pipeline_mode = #tpu.pipeline_mode<synchronous>, transform_indices = @transform_0, window_bounds = array<i64: 2, 320>}, {pipeline_mode = #tpu.pipeline_mode<synchronous>, transform_indices = @transform_1, window_bounds = array<i64: 64, 128>}, {pipeline_mode = #tpu.pipeline_mode<synchronous>, transform_indices = @transform_2, window_bounds = array<i64: 34, 128>}]} {
    %c0 = arith.constant 0 : index
    %c0_0 = arith.constant 0 : index
    %0 = vector.load %arg1[%c0, %c0_0] : memref<2x320xf32, #tpu.memory_space<vmem>>, vector<1x320xf32>
    %1 = vector.extract_strided_slice %0 {offsets = [0, 0], sizes = [1, 64], strides = [1, 1]} : vector<1x320xf32> to vector<1x64xf32>
    %c0_1 = arith.constant 0 : index
    %c0_2 = arith.constant 0 : index
    %2 = vector.load %arg4[%c0_1, %c0_2] : memref<34x64xf32, #tpu.memory_space<vmem>>, vector<1x64xf32>
    tpu.vector_store %arg4[%c0_1, %c0_2], %1 {strides = array<i32>} : memref<34x64xf32, #tpu.memory_space<vmem>>, vector<1x64xf32>,
    %3 = vector.extract_strided_slice %0 {offsets = [0, 16], sizes = [1, 64], strides = [1, 1]} : vector<1x320xf32> to vector<1x64xf32>
    %c1 = arith.constant 1 : index
    %c0_3 = arith.constant 0 : index
    %4 = vector.load %arg4[%c1, %c0_3] : memref<34x64xf32, #tpu.memory_space<vmem>>, vector<1x64xf32>
    tpu.vector_store %arg4[%c1, %c0_3], %3 {strides = array<i32>} : memref<34x64xf32, #tpu.memory_space<vmem>>, vector<1x64xf32>,
    %5 = vector.extract_strided_slice %0 {offsets = [0, 32], sizes = [1, 64], strides = [1, 1]} : vector<1x320xf32> to vector<1x64xf32>
    %c2 = arith.constant 2 : index
    %c0_4 = arith.constant 0 : index
    %6 = vector.load %arg4[%c2, %c0_4] : memref<34x64xf32, #tpu.memory_space<vmem>>, vector<1x64xf32>
    tpu.vector_store %arg4[%c2, %c0_4], %5 {strides = array<i32>} : memref<34x64xf32, #tpu.memory_space<vmem>>, vector<1x64xf32>,
    %7 = vector.extract_strided_slice %0 {offsets = [0, 48], sizes = [1, 64], strides = [1, 1]} : vector<1x320xf32> to vector<1x64xf32>
    %c3 = arith.constant 3 : index
    %c0_5 = arith.constant 0 : index
    %8 = vector.load %arg4[%c3, %c0_5] : memref<34x64xf32, #tpu.memory_space<vmem>>, vector<1x64xf32>
    tpu.vector_store %arg4[%c3, %c0_5], %7 {strides = array<i32>} : memref<34x64xf32, #tpu.memory_space<vmem>>, vector<1x64xf32>,
    %9 = vector.extract_strided_slice %0 {offsets = [0, 64], sizes = [1, 64], strides = [1, 1]} : vector<1x320xf32> to vector<1x64xf32>
    %c4 = arith.constant 4 : index
    %c0_6 = arith.constant 0 : index
    %10 = vector.load %arg4[%c4, %c0_6] : memref<34x64xf32, #tpu.memory_space<vmem>>, vector<1x64xf32>
    tpu.vector_store %arg4[%c4, %c0_6], %9 {strides = array<i32>} : memref<34x64xf32, #tpu.memory_space<vmem>>, vector<1x64xf32>,
    %11 = vector.extract_strided_slice %0 {offsets = [0, 80], sizes = [1, 64], strides = [1, 1]} : vector<1x320xf32> to vector<1x64xf32>
    %c5 = arith.constant 5 : index
    %c0_7 = arith.constant 0 : index
    %12 = vector.load %arg4[%c5, %c0_7] : memref<34x64xf32, #tpu.memory_space<vmem>>, vector<1x64xf32>
    tpu.vector_store %arg4[%c5, %c0_7], %11 {strides = array<i32>} : memref<34x64xf32, #tpu.memory_space<vmem>>, vector<1x64xf32>,
    %13 = vector.extract_strided_slice %0 {offsets = [0, 96], sizes = [1, 64], strides = [1, 1]} : vector<1x320xf32> to vector<1x64xf32>
    %c6 = arith.constant 6 : index
    %c0_8 = arith.constant 0 : index
    %14 = vector.load %arg4[%c6, %c0_8] : memref<34x64xf32, #tpu.memory_space<vmem>>, vector<1x64xf32>
    tpu.vector_store %arg4[%c6, %c0_8], %13 {strides = array<i32>} : memref<34x64xf32, #tpu.memory_space<vmem>>, vector<1x64xf32>,
    %15 = vector.extract_strided_slice %0 {offsets = [0, 112], sizes = [1, 64], strides = [1, 1]} : vector<1x320xf32> to vector<1x64xf32>
    %c7 = arith.constant 7 : index
    %c0_9 = arith.constant 0 : index
    %16 = vector.load %arg4[%c7, %c0_9] : memref<34x64xf32, #tpu.memory_space<vmem>>, vector<1x64xf32>
    tpu.vector_store %arg4[%c7, %c0_9], %15 {strides = array<i32>} : memref<34x64xf32, #tpu.memory_space<vmem>>, vector<1x64xf32>,
    %17 = vector.extract_strided_slice %0 {offsets = [0, 128], sizes = [1, 64], strides = [1, 1]} : vector<1x320xf32> to vector<1x64xf32>
    %c8 = arith.constant 8 : index
    %c0_10 = arith.constant 0 : index
    %18 = vector.load %arg4[%c8, %c0_10] : memref<34x64xf32, #tpu.memory_space<vmem>>, vector<1x64xf32>
    tpu.vector_store %arg4[%c8, %c0_10], %17 {strides = array<i32>} : memref<34x64xf32, #tpu.memory_space<vmem>>, vector<1x64xf32>,
    %19 = vector.extract_strided_slice %0 {offsets = [0, 144], sizes = [1, 64], strides = [1, 1]} : vector<1x320xf32> to vector<1x64xf32>
    %c9 = arith.constant 9 : index
    %c0_11 = arith.constant 0 : index
    %20 = vector.load %arg4[%c9, %c0_11] : memref<34x64xf32, #tpu.memory_space<vmem>>, vector<1x64xf32>
    tpu.vector_store %arg4[%c9, %c0_11], %19 {strides = array<i32>} : memref<34x64xf32, #tpu.memory_space<vmem>>, vector<1x64xf32>,
    %21 = vector.extract_strided_slice %0 {offsets = [0, 160], sizes = [1, 64], strides = [1, 1]} : vector<1x320xf32> to vector<1x64xf32>
    %c10 = arith.constant 10 : index
    %c0_12 = arith.constant 0 : index
    %22 = vector.load %arg4[%c10, %c0_12] : memref<34x64xf32, #tpu.memory_space<vmem>>, vector<1x64xf32>
    tpu.vector_store %arg4[%c10, %c0_12], %21 {strides = array<i32>} : memref<34x64xf32, #tpu.memory_space<vmem>>, vector<1x64xf32>,
    %23 = vector.extract_strided_slice %0 {offsets = [0, 176], sizes = [1, 64], strides = [1, 1]} : vector<1x320xf32> to vector<1x64xf32>
    %c11 = arith.constant 11 : index
    %c0_13 = arith.constant 0 : index
    %24 = vector.load %arg4[%c11, %c0_13] : memref<34x64xf32, #tpu.memory_space<vmem>>, vector<1x64xf32>
    tpu.vector_store %arg4[%c11, %c0_13], %23 {strides = array<i32>} : memref<34x64xf32, #tpu.memory_space<vmem>>, vector<1x64xf32>,
    %25 = vector.extract_strided_slice %0 {offsets = [0, 192], sizes = [1, 64], strides = [1, 1]} : vector<1x320xf32> to vector<1x64xf32>
    %c12 = arith.constant 12 : index
    %c0_14 = arith.constant 0 : index
    %26 = vector.load %arg4[%c12, %c0_14] : memref<34x64xf32, #tpu.memory_space<vmem>>, vector<1x64xf32>
    tpu.vector_store %arg4[%c12, %c0_14], %25 {strides = array<i32>} : memref<34x64xf32, #tpu.memory_space<vmem>>, vector<1x64xf32>,
    %27 = vector.extract_strided_slice %0 {offsets = [0, 208], sizes = [1, 64], strides = [1, 1]} : vector<1x320xf32> to vector<1x64xf32>
    %c13 = arith.constant 13 : index
    %c0_15 = arith.constant 0 : index
    %28 = vector.load %arg4[%c13, %c0_15] : memref<34x64xf32, #tpu.memory_space<vmem>>, vector<1x64xf32>
    tpu.vector_store %arg4[%c13, %c0_15], %27 {strides = array<i32>} : memref<34x64xf32, #tpu.memory_space<vmem>>, vector<1x64xf32>,
    %29 = vector.extract_strided_slice %0 {offsets = [0, 224], sizes = [1, 64], strides = [1, 1]} : vector<1x320xf32> to vector<1x64xf32>
    %c14 = arith.constant 14 : index
    %c0_16 = arith.constant 0 : index
    %30 = vector.load %arg4[%c14, %c0_16] : memref<34x64xf32, #tpu.memory_space<vmem>>, vector<1x64xf32>
    tpu.vector_store %arg4[%c14, %c0_16], %29 {strides = array<i32>} : memref<34x64xf32, #tpu.memory_space<vmem>>, vector<1x64xf32>,
    %31 = vector.extract_strided_slice %0 {offsets = [0, 240], sizes = [1, 64], strides = [1, 1]} : vector<1x320xf32> to vector<1x64xf32>
    %c15 = arith.constant 15 : index
    %c0_17 = arith.constant 0 : index
    %32 = vector.load %arg4[%c15, %c0_17] : memref<34x64xf32, #tpu.memory_space<vmem>>, vector<1x64xf32>
    tpu.vector_store %arg4[%c15, %c0_17], %31 {strides = array<i32>} : memref<34x64xf32, #tpu.memory_space<vmem>>, vector<1x64xf32>,
    %33 = vector.extract_strided_slice %0 {offsets = [0, 256], sizes = [1, 64], strides = [1, 1]} : vector<1x320xf32> to vector<1x64xf32>
    %c16 = arith.constant 16 : index
    %c0_18 = arith.constant 0 : index
    %34 = vector.load %arg4[%c16, %c0_18] : memref<34x64xf32, #tpu.memory_space<vmem>>, vector<1x64xf32>
    tpu.vector_store %arg4[%c16, %c0_18], %33 {strides = array<i32>} : memref<34x64xf32, #tpu.memory_space<vmem>>, vector<1x64xf32>,
    %c1_19 = arith.constant 1 : index
    %c0_20 = arith.constant 0 : index
    %35 = vector.load %arg1[%c1_19, %c0_20] : memref<2x320xf32, #tpu.memory_space<vmem>>, vector<1x320xf32>
    %36 = vector.extract_strided_slice %35 {offsets = [0, 0], sizes = [1, 64], strides = [1, 1]} : vector<1x320xf32> to vector<1x64xf32>
    %c17 = arith.constant 17 : index
    %c0_21 = arith.constant 0 : index
    %37 = vector.load %arg4[%c17, %c0_21] : memref<34x64xf32, #tpu.memory_space<vmem>>, vector<1x64xf32>
    tpu.vector_store %arg4[%c17, %c0_21], %36 {strides = array<i32>} : memref<34x64xf32, #tpu.memory_space<vmem>>, vector<1x64xf32>,
    %38 = vector.extract_strided_slice %35 {offsets = [0, 16], sizes = [1, 64], strides = [1, 1]} : vector<1x320xf32> to vector<1x64xf32>
    %c18 = arith.constant 18 : index
    %c0_22 = arith.constant 0 : index
    %39 = vector.load %arg4[%c18, %c0_22] : memref<34x64xf32, #tpu.memory_space<vmem>>, vector<1x64xf32>
    tpu.vector_store %arg4[%c18, %c0_22], %38 {strides = array<i32>} : memref<34x64xf32, #tpu.memory_space<vmem>>, vector<1x64xf32>,
    %40 = vector.extract_strided_slice %35 {offsets = [0, 32], sizes = [1, 64], strides = [1, 1]} : vector<1x320xf32> to vector<1x64xf32>
    %c19 = arith.constant 19 : index
    %c0_23 = arith.constant 0 : index
    %41 = vector.load %arg4[%c19, %c0_23] : memref<34x64xf32, #tpu.memory_space<vmem>>, vector<1x64xf32>
    tpu.vector_store %arg4[%c19, %c0_23], %40 {strides = array<i32>} : memref<34x64xf32, #tpu.memory_space<vmem>>, vector<1x64xf32>,
    %42 = vector.extract_strided_slice %35 {offsets = [0, 48], sizes = [1, 64], strides = [1, 1]} : vector<1x320xf32> to vector<1x64xf32>
    %c20 = arith.constant 20 : index
    %c0_24 = arith.constant 0 : index
    %43 = vector.load %arg4[%c20, %c0_24] : memref<34x64xf32, #tpu.memory_space<vmem>>, vector<1x64xf32>
    tpu.vector_store %arg4[%c20, %c0_24], %42 {strides = array<i32>} : memref<34x64xf32, #tpu.memory_space<vmem>>, vector<1x64xf32>,
    %44 = vector.extract_strided_slice %35 {offsets = [0, 64], sizes = [1, 64], strides = [1, 1]} : vector<1x320xf32> to vector<1x64xf32>
    %c21 = arith.constant 21 : index
    %c0_25 = arith.constant 0 : index
    %45 = vector.load %arg4[%c21, %c0_25] : memref<34x64xf32, #tpu.memory_space<vmem>>, vector<1x64xf32>
    tpu.vector_store %arg4[%c21, %c0_25], %44 {strides = array<i32>} : memref<34x64xf32, #tpu.memory_space<vmem>>, vector<1x64xf32>,
    %46 = vector.extract_strided_slice %35 {offsets = [0, 80], sizes = [1, 64], strides = [1, 1]} : vector<1x320xf32> to vector<1x64xf32>
    %c22 = arith.constant 22 : index
    %c0_26 = arith.constant 0 : index
    %47 = vector.load %arg4[%c22, %c0_26] : memref<34x64xf32, #tpu.memory_space<vmem>>, vector<1x64xf32>
    tpu.vector_store %arg4[%c22, %c0_26], %46 {strides = array<i32>} : memref<34x64xf32, #tpu.memory_space<vmem>>, vector<1x64xf32>,
    %48 = vector.extract_strided_slice %35 {offsets = [0, 96], sizes = [1, 64], strides = [1, 1]} : vector<1x320xf32> to vector<1x64xf32>
    %c23 = arith.constant 23 : index
    %c0_27 = arith.constant 0 : index
    %49 = vector.load %arg4[%c23, %c0_27] : memref<34x64xf32, #tpu.memory_space<vmem>>, vector<1x64xf32>
    tpu.vector_store %arg4[%c23, %c0_27], %48 {strides = array<i32>} : memref<34x64xf32, #tpu.memory_space<vmem>>, vector<1x64xf32>,
    %50 = vector.extract_strided_slice %35 {offsets = [0, 112], sizes = [1, 64], strides = [1, 1]} : vector<1x320xf32> to vector<1x64xf32>
    %c24 = arith.constant 24 : index
    %c0_28 = arith.constant 0 : index
    %51 = vector.load %arg4[%c24, %c0_28] : memref<34x64xf32, #tpu.memory_space<vmem>>, vector<1x64xf32>
    tpu.vector_store %arg4[%c24, %c0_28], %50 {strides = array<i32>} : memref<34x64xf32, #tpu.memory_space<vmem>>, vector<1x64xf32>,
    %52 = vector.extract_strided_slice %35 {offsets = [0, 128], sizes = [1, 64], strides = [1, 1]} : vector<1x320xf32> to vector<1x64xf32>
    %c25 = arith.constant 25 : index
    %c0_29 = arith.constant 0 : index
    %53 = vector.load %arg4[%c25, %c0_29] : memref<34x64xf32, #tpu.memory_space<vmem>>, vector<1x64xf32>
    tpu.vector_store %arg4[%c25, %c0_29], %52 {strides = array<i32>} : memref<34x64xf32, #tpu.memory_space<vmem>>, vector<1x64xf32>,
    %54 = vector.extract_strided_slice %35 {offsets = [0, 144], sizes = [1, 64], strides = [1, 1]} : vector<1x320xf32> to vector<1x64xf32>
    %c26 = arith.constant 26 : index
    %c0_30 = arith.constant 0 : index
    %55 = vector.load %arg4[%c26, %c0_30] : memref<34x64xf32, #tpu.memory_space<vmem>>, vector<1x64xf32>
    tpu.vector_store %arg4[%c26, %c0_30], %54 {strides = array<i32>} : memref<34x64xf32, #tpu.memory_space<vmem>>, vector<1x64xf32>,
    %56 = vector.extract_strided_slice %35 {offsets = [0, 160], sizes = [1, 64], strides = [1, 1]} : vector<1x320xf32> to vector<1x64xf32>
    %c27 = arith.constant 27 : index
    %c0_31 = arith.constant 0 : index
    %57 = vector.load %arg4[%c27, %c0_31] : memref<34x64xf32, #tpu.memory_space<vmem>>, vector<1x64xf32>
    tpu.vector_store %arg4[%c27, %c0_31], %56 {strides = array<i32>} : memref<34x64xf32, #tpu.memory_space<vmem>>, vector<1x64xf32>,
    %58 = vector.extract_strided_slice %35 {offsets = [0, 176], sizes = [1, 64], strides = [1, 1]} : vector<1x320xf32> to vector<1x64xf32>
    %c28 = arith.constant 28 : index
    %c0_32 = arith.constant 0 : index
    %59 = vector.load %arg4[%c28, %c0_32] : memref<34x64xf32, #tpu.memory_space<vmem>>, vector<1x64xf32>
    tpu.vector_store %arg4[%c28, %c0_32], %58 {strides = array<i32>} : memref<34x64xf32, #tpu.memory_space<vmem>>, vector<1x64xf32>,
    %60 = vector.extract_strided_slice %35 {offsets = [0, 192], sizes = [1, 64], strides = [1, 1]} : vector<1x320xf32> to vector<1x64xf32>
    %c29 = arith.constant 29 : index
    %c0_33 = arith.constant 0 : index
    %61 = vector.load %arg4[%c29, %c0_33] : memref<34x64xf32, #tpu.memory_space<vmem>>, vector<1x64xf32>
    tpu.vector_store %arg4[%c29, %c0_33], %60 {strides = array<i32>} : memref<34x64xf32, #tpu.memory_space<vmem>>, vector<1x64xf32>,
    %62 = vector.extract_strided_slice %35 {offsets = [0, 208], sizes = [1, 64], strides = [1, 1]} : vector<1x320xf32> to vector<1x64xf32>
    %c30 = arith.constant 30 : index
    %c0_34 = arith.constant 0 : index
    %63 = vector.load %arg4[%c30, %c0_34] : memref<34x64xf32, #tpu.memory_space<vmem>>, vector<1x64xf32>
    tpu.vector_store %arg4[%c30, %c0_34], %62 {strides = array<i32>} : memref<34x64xf32, #tpu.memory_space<vmem>>, vector<1x64xf32>,
    %64 = vector.extract_strided_slice %35 {offsets = [0, 224], sizes = [1, 64], strides = [1, 1]} : vector<1x320xf32> to vector<1x64xf32>
    %c31 = arith.constant 31 : index
    %c0_35 = arith.constant 0 : index
    %65 = vector.load %arg4[%c31, %c0_35] : memref<34x64xf32, #tpu.memory_space<vmem>>, vector<1x64xf32>
    tpu.vector_store %arg4[%c31, %c0_35], %64 {strides = array<i32>} : memref<34x64xf32, #tpu.memory_space<vmem>>, vector<1x64xf32>,
    %66 = vector.extract_strided_slice %35 {offsets = [0, 240], sizes = [1, 64], strides = [1, 1]} : vector<1x320xf32> to vector<1x64xf32>
    %c32 = arith.constant 32 : index
    %c0_36 = arith.constant 0 : index
    %67 = vector.load %arg4[%c32, %c0_36] : memref<34x64xf32, #tpu.memory_space<vmem>>, vector<1x64xf32>
    tpu.vector_store %arg4[%c32, %c0_36], %66 {strides = array<i32>} : memref<34x64xf32, #tpu.memory_space<vmem>>, vector<1x64xf32>,
    %68 = vector.extract_strided_slice %35 {offsets = [0, 256], sizes = [1, 64], strides = [1, 1]} : vector<1x320xf32> to vector<1x64xf32>
    %c33 = arith.constant 33 : index
    %c0_37 = arith.constant 0 : index
    %69 = vector.load %arg4[%c33, %c0_37] : memref<34x64xf32, #tpu.memory_space<vmem>>, vector<1x64xf32>
    tpu.vector_store %arg4[%c33, %c0_37], %68 {strides = array<i32>} : memref<34x64xf32, #tpu.memory_space<vmem>>, vector<1x64xf32>,
    %c0_38 = arith.constant 0 : index
    %c0_39 = arith.constant 0 : index
    %70 = vector.load %arg4[%c0_38, %c0_39] : memref<34x64xf32, #tpu.memory_space<vmem>>, vector<34x64xf32>
    %c0_40 = arith.constant 0 : index
    %c0_41 = arith.constant 0 : index
    %71 = vector.load %arg2[%c0_40, %c0_41] : memref<64x128xf32, #tpu.memory_space<vmem>>, vector<64x128xf32>
    %cst = arith.constant dense<0.000000e+00> : vector<34x128xf32>
    %72 = tpu.matmul %70, %71, %cst {dimension_numbers = #tpu.dot_dimension_numbers<[1], [0], [0], [1], [0, 0, 1, 1], [], []>, precision = #tpu.contract_precision<fp32>} : vector<34x64xf32>, vector<64x128xf32>, vector<34x128xf32> -> vector<34x128xf32>
    %c0_42 = arith.constant 0 : index
    %c0_43 = arith.constant 0 : index
    %73 = vector.load %arg3[%c0_42, %c0_43] : memref<34x128xf32, #tpu.memory_space<vmem>>, vector<34x128xf32>
    tpu.vector_store %arg3[%c0_42, %c0_43], %72 {strides = array<i32>} : memref<34x128xf32, #tpu.memory_space<vmem>>, vector<34x128xf32>,
    return
  }
  func.func @transform_0(%arg0: i32) -> (i32, i32) {
    %c0_i32 = arith.constant 0 : i32
    %c0_i32_0 = arith.constant 0 : i32
    %c0_i32_1 = arith.constant 0 : i32
    return %c0_i32, %c0_i32_0 : i32, i32
  }
  func.func @transform_1(%arg0: i32) -> (i32, i32) {
    %c0_i32 = arith.constant 0 : i32
    %c0_i32_0 = arith.constant 0 : i32
    %c0_i32_1 = arith.constant 0 : i32
    return %c0_i32, %c0_i32_0 : i32, i32
  }
  func.func @transform_2(%arg0: i32) -> (i32, i32) {
    %c0_i32 = arith.constant 0 : i32
    %c0_i32_0 = arith.constant 0 : i32
    %c0_i32_1 = arith.constant 0 : i32
    return %c0_i32, %c0_i32_0 : i32, i32
  }
}

</mosaic_0001>

<bundles_post_ra>
// kernel: stft.1
= control target key start
LH: loop header
LB: loop body
LE: loop exit
PB: predicated region body
PF: predicated region fallthrough
CT: control target
= control target key end

     0   :  { %7 = vsyncpa [#allocation4], 0  ;;  %s641_s12 = smov [#allocation3]   ;;  %s642_s14 = smov 128   ;;  %s890_s0 = inlined_call_operand.vmem [shape: f32[2,320], index: 0, kind: input, shape index: {}]   ;;  %s891_s1 = inlined_call_operand.hbm [shape: f32[64,128], index: 1, kind: input, shape index: {}]   ;;  %s892_s2 = inlined_call_operand.vmem [shape: f32[34,128], index: 2, kind: output, shape index: {}]  }
   0x1   :  { %s14_s11 = sshll.u32 %s891_s1, 4  ;;  %s16_s13 = sshll.u32 %s641_s12, 4  ;;  %s15_s11 = int_to_ptr.hbm [resolvable:$true] %s14_s11  ;;  %s17_s13 = int_to_ptr.vmem [resolvable:$true] %s16_s13 }
   0x2   :  { %s643_s15 = smov 8  }
   0x3   :  { %22 = dma.hbm_to_vmem [thread:$0]  %s15_s11, 1024, %s17_s13, [#allocation4], %s642_s14, %s642_s14, %s643_s15  }
   0x4   :  { %639 = dma.done.wait [#allocation4], 1024  }
   0x5   :  { %640 = vsyncadd [#allocation4], 4294966272  ;;  %vm28_vm0 = vcmask 516096   ;;  %v588_v0 = vld [vmem:[%s890_s0 + $0x1] ss:$2 sm:$0x7] }
   0x6   :  { %v113_v1 = vperm.slane %v588_v0, 0  ;;  %111 = vst.msk [vmem:[#allocation2 + $0x11] sm:$0x1] %vm28_vm0, %v588_v0  ;;  %v130_v2 = vperm.slane %v588_v0, 1  ;;  %v170_v3 = vperm.slane %v588_v0, 2  ;;  %s644_s1 = smov 32  }
   0x7   :  { %s645_s18 = smov 48   ;;  %s646_s19 = smov 112   ;;  %v27_v4 = vld [vmem:[%s890_s0] ss:$2 sm:$0x7]  ;;  %v199_v10 = vld [vmem:[#allocation3 + $0x30] sm:$0xff] }
   0x8   :  { %138 = vrot.lane.b32.xlu1 %v113_v1, %s644_s1  ;;  %131 = vrot.lane.b32.xlu0 %v113_v1, %s645_s18  ;;  %153 = vst.msk [vmem:[#allocation2 + $0x19] sm:$0x1] %vm28_vm0, %v130_v2  ;;  %s647_s22 = smov 96   ;;  %v48_v5 = vperm.slane %v27_v4, 1  ;;  %s648_s23 = smov 64   ;;  %v91_v6 = vperm.slane %v27_v4, 2 }
   0x9   :  { %114 = vrot.lane.b32.xlu2 %v113_v1, %s646_s19  ;;  %187 = vst.msk [vmem:[#allocation2 + $0x21] sm:$0x1] %vm28_vm0, %v170_v3  ;;  %s649_s24 = smov 80   ;;  %s650_s25 = smov 16   ;;  %v31_v7 = vperm.slane %v27_v4, 0  ;;  %v200_v8 = vld [vmem:[#allocation3 + $0x38] sm:$0xff] }
   0xa   :  { %29 = vst.msk [vmem:[#allocation2] sm:$0x1] %vm28_vm0, %v27_v4  ;;  %v708_v9 = vand.u32 4294901760, %v200_v8  ;;  %v714_v12 = vand.u32 4294901760, %v199_v10  ;;  %v198_v13 = vld [vmem:[#allocation3 + $0x28] sm:$0xff]  ;;  %v197_v18 = vld [vmem:[#allocation3 + $0x20] sm:$0xff] }
   0xb   :  { %74 = vst.msk [vmem:[#allocation2 + $0x8] sm:$0x1] %vm28_vm0, %v48_v5  ;;  %v722_v16 = vand.u32 4294901760, %v198_v13  ;;  %v734_v22 = vand.u32 4294901760, %v197_v18  ;;  %v196_v23 = vld [vmem:[#allocation3 + $0x18] sm:$0xff]  ;;  %v195_v29 = vld [vmem:[#allocation3 + $0x10] sm:$0xff] }
   0xc   :  { %108 = vst.msk [vmem:[#allocation2 + $0x10] sm:$0x1] %vm28_vm0, %v91_v6  ;;  %v712_v11 = vsub.f32 %v200_v8, %v708_v9  ;;  %589 = vmatpush.msra.mxu2 %v708_v9  ;;  %226 = vmatpush.msra.mxu0 %v708_v9  ;;  %v720_v15 = vsub.f32 %v199_v10, %v714_v12  ;;  %v744_v28 = vand.u32 4294901760, %v196_v23  ;;  %v749_v33 = vand.u32 4294901760, %v195_v29  ;;  %v194_v35 = vld [vmem:[#allocation3 + $0x8] sm:$0xff]  ;;  %v193_v42 = vld [vmem:[#allocation3] sm:$0xff] }
   0xd   :  { %v732_v21 = vsub.f32 %v198_v13, %v722_v16  ;;  %v741_v27 = vsub.f32 %v197_v18, %v734_v22  ;;  %v756_v39 = vand.u32 4294901760, %v194_v35  ;;  %v762_v46 = vand.u32 4294901760, %v193_v42 }
   0xe   :  { %v292_v14 = vand.u32 4294901760, %v712_v11  ;;  %590 = vmatpush.msra.mxu2 %v714_v12  ;;  %228 = vmatpush.msra.mxu0 %v714_v12  ;;  %v298_v20 = vand.u32 4294901760, %v720_v15  ;;  %v315_v34 = vsub.f32 %v196_v23, %v744_v28  ;;  %v321_v38 = vsub.f32 %v195_v29, %v749_v33 }
   0xf   :  { %v304_v26 = vand.u32 4294901760, %v732_v21  ;;  %v310_v32 = vand.u32 4294901760, %v741_v27  ;;  %v327_v45 = vsub.f32 %v194_v35, %v756_v39  ;;  %v333_v50 = vsub.f32 %v193_v42, %v762_v46 }
  0x10   :  { %140 = vrot.lane.b32.xlu1 %v130_v2, %s644_s1  ;;  %133 = vrot.lane.b32.xlu0 %v130_v2, %s645_s18  ;;  %v293_v19 = vsub.f32 %v712_v11, %v292_v14  ;;  %v299_v25 = vsub.f32 %v720_v15, %v298_v20  ;;  %v316_v41 = vand.u32 4294901760, %v315_v34  ;;  %v322_v44 = vand.u32 4294901760, %v321_v38 }
  0x11   :  { %118 = vrot.lane.b32.xlu2 %v113_v1, %s647_s22  ;;  %591 = vmatpush.msra.mxu2 %v722_v16  ;;  %v305_v31 = vsub.f32 %v732_v21, %v304_v26  ;;  %v311_v37 = vsub.f32 %v741_v27, %v310_v32  ;;  %v328_v49 = vand.u32 4294901760, %v327_v45  ;;  %v334_v54 = vand.u32 4294901760, %v333_v50 }
  0x12   :  { %230 = vmatpush.msra.mxu0 %v722_v16  ;;  %v294_v24 = vand.u32 4294901760, %v293_v19  ;;  %v300_v30 = vand.u32 4294901760, %v299_v25  ;;  %v317_v47 = vsub.f32 %v315_v34, %v316_v41  ;;  %v323_v48 = vsub.f32 %v321_v38, %v322_v44 }
  0x13   :  { %592 = vmatpush.msra.mxu2 %v734_v22  ;;  %v306_v36 = vand.u32 4294901760, %v305_v31  ;;  %v312_v43 = vand.u32 4294901760, %v311_v37  ;;  %v329_v53 = vsub.f32 %v327_v45, %v328_v49  ;;  %v335_v56 = vsub.f32 %v333_v50, %v334_v54 }
  0x14   :  { %232 = vmatpush.msra.mxu0 %v734_v22  ;;  %597 = vmatpush.msra.mxu3 %v294_v24  ;;  %v318_v51 = vand.u32 4294901760, %v317_v47  ;;  %v324_v52 = vand.u32 4294901760, %v323_v48  ;;  %vm61_vm1 = vcmask 261120   ;;  %vm53_vm2 = vcmask 392192  }
  0x15   :  { %295 = vmatpush.msra.mxu1 %v294_v24  ;;  %593 = vmatpush.msra.mxu2 %v744_v28  ;;  %v330_v55 = vand.u32 4294901760, %v329_v53  ;;  %v336_v58 = vand.u32 4294901760, %v335_v56  ;;  %vm69_vm3 = vcmask 130048   ;;  %vm201_vm4 = vcmask 523264  }
  0x16   :  { %234 = vmatpush.msra.mxu0 %v744_v28  ;;  %598 = vmatpush.msra.mxu3 %v300_v30 }
  0x17   :  { %301 = vmatpush.msra.mxu1 %v300_v30  ;;  %594 = vmatpush.msra.mxu2 %v749_v33 }
  0x18   :  { %126 = vrot.lane.b32.xlu1 %v113_v1, %s648_s23  ;;  %122 = vrot.lane.b32.xlu0 %v113_v1, %s649_s24 }
  0x19   :  { %145 = vrot.lane.b32.xlu2 %v113_v1, %s650_s25  ;;  %236 = vmatpush.msra.mxu0 %v749_v33 }
  0x1a   :  { %599 = vmatpush.msra.mxu3 %v306_v36  ;;  %307 = vmatpush.msra.mxu1 %v306_v36 }
  0x1b   :  { %595 = vmatpush.msra.mxu2 %v756_v39  ;;  %238 = vmatpush.msra.mxu0 %v756_v39 }
  0x1c   :  { %600 = vmatpush.msra.mxu3 %v312_v43  ;;  %313 = vmatpush.msra.mxu1 %v312_v43 }
  0x1d   :  { %596 = vmatpush.msra.mxu2 %v762_v46  ;;  %240 = vmatpush.msra.mxu0 %v762_v46 }
  0x1e   :  { %601 = vmatpush.msra.mxu3 %v318_v51  ;;  %319 = vmatpush.msra.mxu1 %v318_v51 }
  0x1f   :  { %369 = vmatpush.msrb.mxu2 %v712_v11  ;;  %483 = vmatpush.msrb.mxu0 %v292_v14 }
  0x20   :  { %171 = vrot.lane.b32.xlu1 %v170_v3, %s645_s18  ;;  %147 = vrot.lane.b32.xlu0 %v130_v2, %s650_s25 }
  0x21   :  { %176 = vrot.lane.b32.xlu2 %v170_v3, %s644_s1  ;;  %372 = vmatpush.msrb.mxu2 %v720_v15 }
  0x22   :  { %487 = vmatpush.msrb.mxu0 %v298_v20  ;;  %602 = vmatpush.msra.mxu3 %v324_v52 }
  0x23   :  { %325 = vmatpush.msra.mxu1 %v324_v52  ;;  %375 = vmatpush.msrb.mxu2 %v732_v21 }
  0x24   :  { %491 = vmatpush.msrb.mxu0 %v304_v26  ;;  %603 = vmatpush.msra.mxu3 %v330_v55 }
  0x25   :  { %331 = vmatpush.msra.mxu1 %v330_v55  ;;  %378 = vmatpush.msrb.mxu2 %v741_v27 }
  0x26   :  { %495 = vmatpush.msrb.mxu0 %v310_v32  ;;  %604 = vmatpush.msra.mxu3 %v336_v58 }
  0x27   :  { %337 = vmatpush.msra.mxu1 %v336_v58  ;;  %381 = vmatpush.msrb.mxu2 %v315_v34 }
  0x28   :  { %158 = vrot.lane.b32.xlu1 %v130_v2, %s647_s22  ;;  %154 = vrot.lane.b32.xlu0 %v130_v2, %s646_s19 }
  0x29   :  { %162 = vrot.lane.b32.xlu2 %v130_v2, %s649_s24  ;;  %426 = vmatpush.msrb.mxu3 %v708_v9 }
  0x2a   :  { %542 = vmatpush.msrb.mxu1 %v708_v9  ;;  %499 = vmatpush.msrb.mxu0 %v316_v41 }
  0x2b   :  { %428 = vmatpush.msrb.mxu3 %v714_v12  ;;  %384 = vmatpush.msrb.mxu2 %v321_v38 }
  0x2c   :  { %544 = vmatpush.msrb.mxu1 %v714_v12  ;;  %503 = vmatpush.msrb.mxu0 %v322_v44 }
  0x2d   :  { %430 = vmatpush.msrb.mxu3 %v722_v16  ;;  %387 = vmatpush.msrb.mxu2 %v327_v45 }
  0x2e   :  { %546 = vmatpush.msrb.mxu1 %v722_v16  ;;  %507 = vmatpush.msrb.mxu0 %v328_v49 }
  0x2f   :  { %432 = vmatpush.msrb.mxu3 %v734_v22  ;;  %390 = vmatpush.msrb.mxu2 %v333_v50 }
  0x30   :  { %181 = vrot.lane.b32.xlu1 %v170_v3, %s650_s25  ;;  %166 = vrot.lane.b32.xlu0 %v130_v2, %s648_s23 }
  0x31   :  { %49 = vrot.lane.b32.xlu2 %v31_v7, %s645_s18  ;;  %548 = vmatpush.msrb.mxu1 %v734_v22 }
  0x32   :  { %511 = vmatpush.msrb.mxu0 %v334_v54  ;;  %434 = vmatpush.msrb.mxu3 %v744_v28 }
  0x33   :  { %550 = vmatpush.msrb.mxu1 %v744_v28 }
  0x34   :  { %436 = vmatpush.msrb.mxu3 %v749_v33 }
  0x35   :  { %552 = vmatpush.msrb.mxu1 %v749_v33 }
  0x36   :  { %438 = vmatpush.msrb.mxu3 %v756_v39 }
  0x37   :  { %554 = vmatpush.msrb.mxu1 %v756_v39 }
  0x38   :  { %51 = vrot.lane.b32.xlu0 %v48_v5, %s645_s18  ;;  %57 = vrot.lane.b32.xlu1 %v31_v7, %s644_s1 }
  0x39   :  { %59 = vrot.lane.b32.xlu2 %v48_v5, %s644_s1  ;;  %440 = vmatpush.msrb.mxu3 %v762_v46 }
  0x3a   :  { %556 = vmatpush.msrb.mxu1 %v762_v46 }
  0x40   :  { %65 = vrot.lane.b32.xlu0 %v31_v7, %s650_s25  ;;  %67 = vrot.lane.b32.xlu1 %v48_v5, %s650_s25 }
  0x41   :  { %32 = vrot.lane.b32.xlu2 %v31_v7, %s646_s19 }
  0x48   :  { %36 = vrot.lane.b32.xlu0 %v31_v7, %s647_s22  ;;  %40 = vrot.lane.b32.xlu1 %v31_v7, %s649_s24 }
  0x49   :  { %44 = vrot.lane.b32.xlu2 %v31_v7, %s648_s23 }
  0x50   :  { %92 = vrot.lane.b32.xlu0 %v91_v6, %s645_s18  ;;  %97 = vrot.lane.b32.xlu1 %v91_v6, %s644_s1 }
  0x51   :  { %102 = vrot.lane.b32.xlu2 %v91_v6, %s650_s25 }
  0x58   :  { %75 = vrot.lane.b32.xlu0 %v48_v5, %s646_s19  ;;  %79 = vrot.lane.b32.xlu1 %v48_v5, %s647_s22 }
  0x59   :  { %83 = vrot.lane.b32.xlu2 %v48_v5, %s649_s24 }
  0x60   :  { %87 = vrot.lane.b32.xlu0 %v48_v5, %s648_s23 }
  0x63   :  { %v115_v17 = vpop.permute.xlu2 %114 }
  0x64   :  { %117 = vst.msk [vmem:[#allocation2 + $0x12] sm:$0x1] %vm28_vm0, %v115_v17 }
  0x6b   :  { %v119_v40 = vpop.permute.xlu2 %118 }
  0x6c   :  { %121 = vst.msk [vmem:[#allocation2 + $0x13] sm:$0x1] %vm28_vm0, %v119_v40 }
  0x73   :  { %v146_v57 = vpop.permute.xlu2 %145 }
  0x7a   :  { %v139_v59 = vpop.permute.xlu1 %138  ;;  %v132_v60 = vpop.permute.xlu0 %131 }
  0x7b   :  { %v177_v61 = vpop.permute.xlu2 %176 }
  0x82   :  { %v141_v62 = vpop.permute.xlu1 %140  ;;  %v134_v63 = vpop.permute.xlu0 %133 }
  0x83   :  { %v142_v0 = vsel %vm61_vm1, %v139_v59, %v141_v62  ;;  %v135_v1 = vsel %vm53_vm2, %v132_v60, %v134_v63  ;;  %v178_v2 = vsel %vm61_vm1, %v141_v62, %v177_v61  ;;  %v163_v3 = vpop.permute.xlu2 %162 }
  0x84   :  { %144 = vst.msk [vmem:[#allocation2 + $0x17] sm:$0x1] %vm28_vm0, %v142_v0 }
  0x85   :  { %137 = vst.msk [vmem:[#allocation2 + $0x16] sm:$0x1] %vm28_vm0, %v135_v1 }
  0x86   :  { %180 = vst.msk [vmem:[#allocation2 + $0x1f] sm:$0x1] %vm28_vm0, %v178_v2 }
  0x87   :  { %165 = vst.msk [vmem:[#allocation2 + $0x1c] sm:$0x1] %vm28_vm0, %v163_v3 }
  0x8a   :  { %v127_v4 = vpop.permute.xlu1 %126  ;;  %v123_v5 = vpop.permute.xlu0 %122 }
  0x8b   :  { %129 = vst.msk [vmem:[#allocation2 + $0x15] sm:$0x1] %vm28_vm0, %v127_v4  ;;  %v50_v6 = vpop.permute.xlu2 %49 }
  0x8c   :  { %125 = vst.msk [vmem:[#allocation2 + $0x14] sm:$0x1] %vm28_vm0, %v123_v5 }
  0x92   :  { %v172_v7 = vpop.permute.xlu1 %171  ;;  %v148_v8 = vpop.permute.xlu0 %147 }
  0x93   :  { %v173_v9 = vsel %vm53_vm2, %v134_v63, %v172_v7  ;;  %v149_v10 = vsel %vm69_vm3, %v146_v57, %v148_v8  ;;  %v190_v11 = vld [vmem:[#allocation2 + $0x10] sm:$0xff]  ;;  %v802_v12 = vpop.permute.xlu2 %59 }
  0x94   :  { %175 = vst.msk [vmem:[#allocation2 + $0x1e] sm:$0x1] %vm28_vm0, %v173_v9  ;;  %v209_v13 = vsel %vm201_vm4, %v190_v11, 0 }
  0x95   :  { %151 = vst.msk [vmem:[#allocation2 + $0x18] sm:$0x1] %vm28_vm0, %v149_v10  ;;  %v807_v14 = vand.u32 4294901760, %v209_v13 }
  0x97   :  { %347 = vmatmul.f32.vlgmr.msra.gmra.mxu3 %v807_v14  ;;  %v811_v15 = vsub.f32 %v209_v13, %v807_v14 }
  0x99   :  { %v259_v16 = vand.u32 4294901760, %v811_v15 }
  0x9a   :  { %v159_v17 = vpop.permute.xlu1 %158  ;;  %v155_v18 = vpop.permute.xlu0 %154 }
  0x9b   :  { %161 = vst.msk [vmem:[#allocation2 + $0x1b] sm:$0x1] %vm28_vm0, %v159_v17  ;;  %v260_v19 = vsub.f32 %v811_v15, %v259_v16  ;;  %v33_v20 = vpop.permute.xlu2 %32 }
  0x9c   :  { %157 = vst.msk [vmem:[#allocation2 + $0x1a] sm:$0x1] %vm28_vm0, %v155_v18 }
  0x9d   :  { %v261_v21 = vand.u32 4294901760, %v260_v19  ;;  %35 = vst.msk [vmem:[#allocation2 + $0x1] sm:$0x1] %vm28_vm0, %v33_v20 }
  0x9f   :  { %262 = vmatmul.f32.vlgmr.msra.gmra.mxu2 %v261_v21 }
  0xa2   :  { %v182_v22 = vpop.permute.xlu1 %181  ;;  %v167_v23 = vpop.permute.xlu0 %166 }
  0xa3   :  { %v183_v24 = vsel %vm69_vm3, %v148_v8, %v182_v22  ;;  %169 = vst.msk [vmem:[#allocation2 + $0x1d] sm:$0x1] %vm28_vm0, %v167_v23  ;;  %v45_v25 = vpop.permute.xlu2 %44 }
  0xa4   :  { %185 = vst.msk [vmem:[#allocation2 + $0x20] sm:$0x1] %vm28_vm0, %v183_v24 }
  0xa5   :  { %47 = vst.msk [vmem:[#allocation2 + $0x4] sm:$0x1] %vm28_vm0, %v45_v25 }
  0xaa   :  { %v52_v26 = vpop.permute.xlu0 %51  ;;  %v58_v27 = vpop.permute.xlu1 %57  ;;  %v191_v28 = vld [vmem:[#allocation2 + $0x18] sm:$0xff] }
  0xab   :  { %v54_v29 = vsel %vm53_vm2, %v50_v6, %v52_v26  ;;  %v62_v30 = vsel %vm61_vm1, %v58_v27, %v802_v12  ;;  %v212_v31 = vsel %vm201_vm4, %v191_v28, 0  ;;  %v192_v32 = vld [vmem:[#allocation2 + $0x20] sm:$0x3]  ;;  %v103_v33 = vpop.permute.xlu2 %102 }
  0xac   :  { %56 = vst.msk [vmem:[#allocation2 + $0x5] sm:$0x1] %vm28_vm0, %v54_v29  ;;  %v829_v34 = vand.u32 4294901760, %v212_v31  ;;  %v215_v35 = vsel %vm201_vm4, %v192_v32, 0 }
  0xad   :  { %64 = vst.msk [vmem:[#allocation2 + $0x6] sm:$0x1] %vm28_vm0, %v62_v30  ;;  %v833_v36 = vand.u32 4294901760, %v215_v35 }
  0xae   :  { %351 = vmatmul.f32.gmra.mxu3 %v829_v34  ;;  %v837_v37 = vsub.f32 %v212_v31, %v829_v34 }
  0xaf   :  { %v841_v39 = vsub.f32 %v215_v35, %v833_v36 }
  0xb0   :  { %v267_v38 = vand.u32 4294901760, %v837_v37 }
  0xb1   :  { %v275_v47 = vand.u32 4294901760, %v841_v39 }
  0xb2   :  { %v66_v40 = vpop.permute.xlu0 %65  ;;  %v68_v41 = vpop.permute.xlu1 %67  ;;  %v268_v42 = vsub.f32 %v837_v37, %v267_v38 }
  0xb3   :  { %v70_v43 = vsel %vm69_vm3, %v66_v40, %v68_v41  ;;  %v104_v44 = vsel %vm69_vm3, %v68_v41, %v103_v33  ;;  %v84_v45 = vpop.permute.xlu2 %83  ;;  %v276_v48 = vsub.f32 %v841_v39, %v275_v47 }
  0xb4   :  { %72 = vst.msk [vmem:[#allocation2 + $0x7] sm:$0x1] %vm28_vm0, %v70_v43  ;;  %v269_v46 = vand.u32 4294901760, %v268_v42 }
  0xb5   :  { %106 = vst.msk [vmem:[#allocation2 + $0xf] sm:$0x1] %vm28_vm0, %v104_v44  ;;  %v277_v51 = vand.u32 4294901760, %v276_v48 }
  0xb6   :  { %270 = vmatmul.f32.gmra.mxu2 %v269_v46  ;;  %355 = vmatmul.f32.gmra.mxu3 %v833_v36  ;;  %86 = vst.msk [vmem:[#allocation2 + $0xb] sm:$0x1] %vm28_vm0, %v84_v45 }
  0xba   :  { %v37_v49 = vpop.permute.xlu0 %36  ;;  %v41_v50 = vpop.permute.xlu1 %40 }
  0xbb   :  { %39 = vst.msk [vmem:[#allocation2 + $0x2] sm:$0x1] %vm28_vm0, %v37_v49 }
  0xbc   :  { %43 = vst.msk [vmem:[#allocation2 + $0x3] sm:$0x1] %vm28_vm0, %v41_v50 }
  0xbe   :  { %278 = vmatmul.f32.gmra.mxu2 %v277_v51 }
  0xc2   :  { %v93_v52 = vpop.permute.xlu0 %92  ;;  %v98_v53 = vpop.permute.xlu1 %97 }
  0xc3   :  { %v94_v54 = vsel %vm53_vm2, %v52_v26, %v93_v52  ;;  %v99_v55 = vsel %vm61_vm1, %v802_v12, %v98_v53  ;;  %v188_v56 = vld [vmem:[#allocation2] sm:$0xff] }
  0xc4   :  { %96 = vst.msk [vmem:[#allocation2 + $0xd] sm:$0x1] %vm28_vm0, %v94_v54  ;;  %v203_v57 = vsel %vm201_vm4, %v188_v56, 0 }
  0xc5   :  { %101 = vst.msk [vmem:[#allocation2 + $0xe] sm:$0x1] %vm28_vm0, %v99_v55  ;;  %v241_v58 = vand.u32 4294901760, %v203_v57 }
  0xc7   :  { %339 = vmatmul.f32.vlgmr.msra.gmra.mxu1 %v241_v58  ;;  %v242_v59 = vsub.f32 %v203_v57, %v241_v58 }
  0xc9   :  { %393 = vmatmul.f32.vlgmr.msrb.gmra.mxu2 %v242_v59  ;;  %v243_v60 = vand.u32 4294901760, %v242_v59 }
  0xca   :  { %v76_v61 = vpop.permute.xlu0 %75  ;;  %v80_v62 = vpop.permute.xlu1 %79 }
  0xcb   :  { %78 = vst.msk [vmem:[#allocation2 + $0x9] sm:$0x1] %vm28_vm0, %v76_v61  ;;  %444 = vmatmul.f32.vlgmr.msrb.gmra.mxu3 %v243_v60  ;;  %v244_v63 = vsub.f32 %v242_v59, %v243_v60 }
  0xcc   :  { %82 = vst.msk [vmem:[#allocation2 + $0xa] sm:$0x1] %vm28_vm0, %v80_v62 }
  0xcd   :  { %v245_v0 = vand.u32 4294901760, %v244_v63 }
  0xcf   :  { %246 = vmatmul.f32.vlgmr.msra.gmra.mxu0 %v245_v0 }
  0xd2   :  { %v88_v1 = vpop.permute.xlu0 %87 }
  0xd3   :  { %90 = vst.msk [vmem:[#allocation2 + $0xc] sm:$0x1] %vm28_vm0, %v88_v1 }
  0xda   :  { %v189_v2 = vld [vmem:[#allocation2 + $0x8] sm:$0xff] }
  0xdb   :  { %v206_v3 = vsel %vm201_vm4, %v189_v2, 0 }
  0xdc   :  { %v249_v4 = vand.u32 4294901760, %v206_v3 }
  0xde   :  { %343 = vmatmul.f32.gmra.mxu1 %v249_v4  ;;  %v250_v5 = vsub.f32 %v206_v3, %v249_v4 }
  0xe0   :  { %398 = vmatmul.f32.gmra.mxu2 %v250_v5  ;;  %v251_v6 = vand.u32 4294901760, %v250_v5 }
  0xe2   :  { %450 = vmatmul.f32.gmra.mxu3 %v251_v6  ;;  %v252_v7 = vsub.f32 %v250_v5, %v251_v6 }
  0xe4   :  { %v253_v8 = vand.u32 4294901760, %v252_v7 }
  0xe6   :  { %254 = vmatmul.f32.gmra.mxu0 %v253_v8  ;;  %558 = vmatmul.f32.vlgmr.msrb.gmra.mxu1 %v241_v58 }
  0xe8   :  { %403 = vmatmul.f32.gmra.mxu2 %v811_v15 }
  0xea   :  { %456 = vmatmul.f32.gmra.mxu3 %v259_v16 }
  0xee   :  { %513 = vmatmul.f32.vlgmr.msrb.gmra.mxu0 %v241_v58  ;;  %562 = vmatmul.f32.gmra.mxu1 %v249_v4 }
  0xf0   :  { %408 = vmatmul.f32.gmra.mxu2 %v837_v37 }
  0xf2   :  { %462 = vmatmul.f32.gmra.mxu3 %v267_v38 }
  0xf6   :  { %517 = vmatmul.f32.gmra.mxu0 %v249_v4  ;;  %566 = vmatmul.f32.gmra.mxu1 %v807_v14 }
  0xf8   :  { %413 = vmatmul.f32.gmra.mxu2 %v841_v39 }
  0xfa   :  { %468 = vmatmul.f32.gmra.mxu3 %v275_v47 }
  0xfe   :  { %521 = vmatmul.f32.gmra.mxu0 %v807_v14  ;;  %570 = vmatmul.f32.gmra.mxu1 %v829_v34 }
 0x106   :  { %525 = vmatmul.f32.gmra.mxu0 %v829_v34  ;;  %574 = vmatmul.f32.gmra.mxu1 %v833_v36 }
 0x10e   :  { %529 = vmatmul.f32.gmra.mxu0 %v833_v36 }
 0x11a   :  { %v348_v10 = vpop.f32.mrf.mxu3 }
 0x122   :  { %v263_v9 = vpop.f32.mrf.mxu2 }
 0x123   :  { %v349_v37 = vadd.f32 %v348_v10, %v263_v9 }
 0x131   :  { %v352_v12 = vpop.f32.mrf.mxu3 }
 0x139   :  { %v271_v11 = vpop.f32.mrf.mxu2  ;;  %v356_v16 = vpop.f32.mrf.mxu3 }
 0x13a   :  { %v353_v45 = vadd.f32 %v352_v12, %v271_v11 }
 0x141   :  { %v279_v15 = vpop.f32.mrf.mxu2 }
 0x142   :  { %v357_v54 = vadd.f32 %v356_v16, %v279_v15 }
 0x144   :  { %v340_v13 = vpop.f32.mrf.mxu1 }
 0x14c   :  { %v247_v17 = vpop.f32.mrf.mxu0  ;;  %v394_v19 = vpop.f32.mrf.mxu2 }
 0x14d   :  { %v341_v14 = vadd.f32 %v340_v13, %v247_v17 }
 0x14e   :  { %v445_v20 = vpop.f32.mrf.mxu3 }
 0x14f   :  { %v395_v24 = vadd.f32 %v394_v19, %v341_v14 }
 0x151   :  { %v446_v26 = vadd.f32 %v445_v20, %v395_v24 }
 0x15b   :  { %v344_v18 = vpop.f32.mrf.mxu1 }
 0x163   :  { %v255_v21 = vpop.f32.mrf.mxu0  ;;  %v399_v22 = vpop.f32.mrf.mxu2 }
 0x164   :  { %v559_v23 = vpop.f32.mrf.mxu1  ;;  %v345_v27 = vadd.f32 %v344_v18, %v255_v21 }
 0x165   :  { %v451_v25 = vpop.f32.mrf.mxu3 }
 0x166   :  { %v400_v30 = vadd.f32 %v399_v22, %v345_v27 }
 0x168   :  { %v452_v34 = vadd.f32 %v451_v25, %v400_v30 }
 0x16b   :  { %v514_v28 = vpop.f32.mrf.mxu0  ;;  %v404_v31 = vpop.f32.mrf.mxu2 }
 0x16c   :  { %v515_v29 = vadd.f32 %v514_v28, %v446_v26  ;;  %v563_v33 = vpop.f32.mrf.mxu1  ;;  %v405_v39 = vadd.f32 %v404_v31, %v349_v37 }
 0x16d   :  { %v457_v35 = vpop.f32.mrf.mxu3 }
 0x16e   :  { %v560_v32 = vadd.f32 %v559_v23, %v515_v29  ;;  %v458_v43 = vadd.f32 %v457_v35, %v405_v39 }
 0x170   :  { %578 = vst [vmem:[%s892_s2] sm:$0xff] %v560_v32 }
 0x173   :  { %v518_v36 = vpop.f32.mrf.mxu0  ;;  %v409_v41 = vpop.f32.mrf.mxu2 }
 0x174   :  { %v519_v38 = vadd.f32 %v518_v36, %v452_v34  ;;  %v567_v42 = vpop.f32.mrf.mxu1  ;;  %v410_v48 = vadd.f32 %v409_v41, %v353_v45 }
 0x175   :  { %v463_v47 = vpop.f32.mrf.mxu3 }
 0x176   :  { %v564_v40 = vadd.f32 %v563_v33, %v519_v38  ;;  %v464_v50 = vadd.f32 %v463_v47, %v410_v48 }
 0x178   :  { %579 = vst [vmem:[%s892_s2 + $0x8] sm:$0xff] %v564_v40 }
 0x17b   :  { %v522_v44 = vpop.f32.mrf.mxu0  ;;  %v414_v51 = vpop.f32.mrf.mxu2 }
 0x17c   :  { %v523_v46 = vadd.f32 %v522_v44, %v458_v43  ;;  %v571_v52 = vpop.f32.mrf.mxu1  ;;  %v415_v56 = vadd.f32 %v414_v51, %v357_v54 }
 0x17d   :  { %v469_v58 = vpop.f32.mrf.mxu3 }
 0x17e   :  { %v568_v49 = vadd.f32 %v567_v42, %v523_v46  ;;  %v470_v59 = vadd.f32 %v469_v58, %v415_v56 }
 0x180   :  { %580 = vst [vmem:[%s892_s2 + $0x10] sm:$0xff] %v568_v49 }
 0x183   :  { %v526_v53 = vpop.f32.mrf.mxu0 }
 0x184   :  { %v527_v55 = vadd.f32 %v526_v53, %v464_v50  ;;  %v575_v62 = vpop.f32.mrf.mxu1 }
 0x186   :  { %v572_v57 = vadd.f32 %v571_v52, %v527_v55 }
 0x188   :  { %581 = vst [vmem:[%s892_s2 + $0x18] sm:$0xff] %v572_v57 }
 0x18b   :  { %v530_v60 = vpop.f32.mrf.mxu0 }
 0x18c   :  { %v531_v61 = vadd.f32 %v530_v60, %v470_v59 }
 0x18e   :  { %v576_v63 = vadd.f32 %v575_v62, %v531_v61 }
 0x190   :  { %582 = vst [vmem:[%s892_s2 + $0x20] sm:$0x3] %v576_v63 }
 0x191   :  { %587 = vsyncpa [#allocation4], 1 }

</bundles_post_ra>
